<compile_context>
chip_gen: v5e
topology: v5e:2x2
jax: 0.10.0
libtpu: 0.0.40
codegen_flags: <defaults>
</compile_context>

<pallas_src>
import functools

import jax
import jax.numpy as jnp
from jax.experimental import pallas as pl
from jax.experimental.pallas import tpu as pltpu


def _box3x3(x):
    """3x3 box sum with zero padding of x[planes, H, W] via shifted adds."""
    zr = jnp.zeros_like(x[:, :1, :])
    v = (x
         + jnp.concatenate([x[:, 1:, :], zr], axis=1)        # row h+1
         + jnp.concatenate([zr, x[:, :-1, :]], axis=1))      # row h-1
    zc = jnp.zeros_like(v[:, :, :1])
    return (v
            + jnp.concatenate([v[:, :, 1:], zc], axis=2)     # col w+1
            + jnp.concatenate([zc, v[:, :, :-1]], axis=2))   # col w-1


def _laplacian_l1_kernel(gen_ref, tgt_ref, out_ref, acc_ref, *,
                         nc_total, block_nc, inner_steps):
    p = pl.program_id(0)          # parallel (TensorCore) slice
    s = pl.program_id(1)          # reduction step within the slice

    # Fresh accumulator at the start of each slice's reduction.
    @pl.when(s == 0)
    def _():
        acc_ref[...] = jnp.zeros_like(acc_ref)

    # Laplacian is linear: lap(g) - lap(t) == lap(g - t)  ->  one box filter.
    d = gen_ref[...].astype(jnp.float32) - tgt_ref[...].astype(jnp.float32)
    a = jnp.abs(9.0 * d - _box3x3(d))                      # (block_nc, H, W)

    # Reduce only the sublane (H) axis per step; keep lanes for the VPU acc.
    part = jnp.sum(a, axis=1)                              # (block_nc, W)

    # Mask planes past the end of the array (ragged last block and the padded
    # parallel split re-read a clamped duplicate block -> contribute zero).
    base = (p * inner_steps + s) * block_nc                # first global plane
    ids = jax.lax.broadcasted_iota(jnp.int32, part.shape, 0)
    part = jnp.where(ids < (nc_total - base), part, 0.0)

    acc_ref[...] += part                                   # VPU elementwise

    # Single cross-lane reduction, once per slice; scaling done in wrapper.
    @pl.when(s == pl.num_programs(1) - 1)
    def _():
        out_ref[...] = (jnp.zeros(out_ref.shape, out_ref.dtype)
                        + jnp.sum(acc_ref[...]))


def laplacian_l1_loss(generated, target, *, target_block_bytes=1024 * 1024):
    assert generated.shape == target.shape, "generated/target shapes must match"
    n, c, h, w = generated.shape
    nc = n * c

    g = generated.reshape(nc, h, w)
    t = target.reshape(nc, h, w)

    plane_bytes = h * w * jnp.dtype(generated.dtype).itemsize
    # Largest number of (H, W) planes per block keeping an input block ~1 MiB
    # (>=85% of HBM roofline; double-buffered x 2 inputs + f32 temps fits the
    # scoped VMEM budget on v5e/v6e/v7x).
    block_nc = int(max(1, min(nc, target_block_bytes // max(1, plane_bytes))))
    # TODO(synk): if a single plane exceeds a few MiB (very large H*W), add
    # spatial row-tiling with a 1-row halo instead of whole-plane blocks.

    total_blocks = pl.cdiv(nc, block_nc)
    n_parallel = 2 if total_blocks >= 2 else 1   # 2 TCs on v7x; no-op on v5e/v6e
    inner_steps = pl.cdiv(total_blocks, n_parallel)

    def in_index(p, s):
        # Clamp so the padded tail of a parallel slice re-reads a valid block;
        # its contribution is masked to zero inside the kernel.
        return (jnp.minimum(p * inner_steps + s, total_blocks - 1), 0, 0)

    kernel = functools.partial(
        _laplacian_l1_kernel,
        nc_total=nc, block_nc=block_nc, inner_steps=inner_steps)

    partials = pl.pallas_call(
        kernel,
        out_shape=jax.ShapeDtypeStruct((n_parallel, 1, 1), jnp.float32),
        grid_spec=pltpu.PrefetchScalarGridSpec(
            num_scalar_prefetch=0,
            grid=(n_parallel, inner_steps),
            in_specs=[
                pl.BlockSpec((block_nc, h, w), in_index),
                pl.BlockSpec((block_nc, h, w), in_index),
            ],
            # Per-parallel-slice partial sum -> safe with "parallel" semantics.
            out_specs=pl.BlockSpec((1, 1, 1), lambda p, s: (p, 0, 0)),
            scratch_shapes=[pltpu.VMEM((block_nc, w), jnp.float32)],
        ),
        compiler_params=pltpu.CompilerParams(
            dimension_semantics=("parallel", "arbitrary"),
            # 2 inputs x 2 pipeline buffers x ~1 MiB blocks + f32 temporaries:
            # raise v5e's 16 MiB scoped default, stay well under v7x's 64 MiB.
            vmem_limit_bytes=32 * 1024 * 1024,
        ),
    )(g, t)

    return jnp.sum(partials) * (1.0 / float(n * c * h * w))


def _reference(generated, target):
    cdim = generated.shape[1]
    k = jnp.array([[-1., -1., -1.], [-1., 8., -1.], [-1., -1., -1.]],
                  jnp.float32)
    kern = jnp.broadcast_to(k, (cdim, 1, 3, 3))

    def lap(x):
        return jax.lax.conv_general_dilated(
            x.astype(jnp.float32), kern, window_strides=(1, 1),
            padding=((1, 1), (1, 1)),
            dimension_numbers=("NCHW", "OIHW", "NCHW"),
            feature_group_count=cdim,
            precision=jax.lax.Precision.HIGHEST)

    return jnp.mean(jnp.abs(lap(generated) - lap(target)))


if __name__ == "__main__":
    key = jax.random.PRNGKey(0)
    k1, k2 = jax.random.split(key)
    # NCHW with 3 channels, as the module's depthwise (groups=3) kernel implies.
    generated = jax.random.normal(k1, (2, 3, 16, 16), dtype=jnp.float32)
    target = jax.random.normal(k2, (2, 3, 16, 16), dtype=jnp.float32)

    loss = laplacian_l1_loss(generated, target)
    loss = jax.block_until_ready(loss)

    ref = _reference(generated, target)
    assert jnp.allclose(loss, ref, rtol=1e-4, atol=1e-5), (loss, ref)
    print("KERNEL_OK")
</pallas_src>

<mosaic_0001>
module attributes {stable_mosaic.version = 11 : i64} {
  func.func @_laplacian_l1_kernel(%arg0: i32, %arg1: i32, %arg2: memref<6x16x16xf32, #tpu.memory_space<vmem>>, %arg3: memref<6x16x16xf32, #tpu.memory_space<vmem>>, %arg4: memref<1x1x1xf32, #tpu.memory_space<vmem>>, %arg5: memref<6x16xf32, #tpu.memory_space<vmem>>) attributes {dimension_semantics = [#tpu.dimension_semantics<parallel>, #tpu.dimension_semantics<arbitrary>], iteration_bounds = array<i64: 1, 1>, scalar_prefetch = 0 : i64, scratch_operands = 1 : i64, tpu.core_type = #tpu.core_type<tc>, window_params = [{transform_indices = @transform_0, window_bounds = array<i64: 6, 16, 16>}, {transform_indices = @transform_1, window_bounds = array<i64: 6, 16, 16>}, {transform_indices = @transform_2, window_bounds = array<i64: 1, 1, 1>}]} {
    %c0_i32 = arith.constant 0 : i32
    %0 = arith.cmpi eq, %arg1, %c0_i32 : i32
    %1 = arith.extui %0 : i1 to i32
    %c0_i32_0 = arith.constant 0 : i32
    %2 = arith.cmpi ne, %1, %c0_i32_0 : i32
    scf.if %2 {
      %cst_17 = arith.constant 0.000000e+00 : f32
      %40 = vector.broadcast %cst_17 : f32 to vector<6x16xf32>
      %c0_18 = arith.constant 0 : index
      %c0_19 = arith.constant 0 : index
      %41 = vector.load %arg5[%c0_18, %c0_19] : memref<6x16xf32, #tpu.memory_space<vmem>>, vector<6x16xf32>
      tpu.vector_store %arg5[%c0_18, %c0_19], %40 {strides = array<i32>} : memref<6x16xf32, #tpu.memory_space<vmem>>, vector<6x16xf32>,
    } else {
    }
    %c0 = arith.constant 0 : index
    %c0_1 = arith.constant 0 : index
    %c0_2 = arith.constant 0 : index
    %3 = vector.load %arg2[%c0, %c0_1, %c0_2] : memref<6x16x16xf32, #tpu.memory_space<vmem>>, vector<6x16x16xf32>
    %c0_3 = arith.constant 0 : index
    %c0_4 = arith.constant 0 : index
    %c0_5 = arith.constant 0 : index
    %4 = vector.load %arg3[%c0_3, %c0_4, %c0_5] : memref<6x16x16xf32, #tpu.memory_space<vmem>>, vector<6x16x16xf32>
    %5 = arith.subf %3, %4 : vector<6x16x16xf32>
    %cst = arith.constant 9.000000e+00 : f32
    %6 = vector.broadcast %cst : f32 to vector<6x16x16xf32>
    %7 = arith.mulf %6, %5 : vector<6x16x16xf32>
    %cst_6 = arith.constant 0.000000e+00 : f32
    %8 = vector.broadcast %cst_6 : f32 to vector<6x1x16xf32>
    %9 = vector.extract_strided_slice %5 {offsets = [0, 1, 0], sizes = [6, 15, 16], strides = [1, 1, 1]} : vector<6x16x16xf32> to vector<6x15x16xf32>
    %10 = tpu.concatenate %9, %8 in 1 : vector<6x15x16xf32>, vector<6x1x16xf32> -> vector<6x16x16xf32>
    %11 = arith.addf %5, %10 : vector<6x16x16xf32>
    %12 = vector.extract_strided_slice %5 {offsets = [0, 0, 0], sizes = [6, 15, 16], strides = [1, 1, 1]} : vector<6x16x16xf32> to vector<6x15x16xf32>
    %13 = tpu.concatenate %8, %12 in 1 : vector<6x1x16xf32>, vector<6x15x16xf32> -> vector<6x16x16xf32>
    %14 = arith.addf %11, %13 : vector<6x16x16xf32>
    %cst_7 = arith.constant 0.000000e+00 : f32
    %15 = vector.broadcast %cst_7 : f32 to vector<6x16x1xf32>
    %16 = vector.extract_strided_slice %14 {offsets = [0, 0, 1], sizes = [6, 16, 15], strides = [1, 1, 1]} : vector<6x16x16xf32> to vector<6x16x15xf32>
    %17 = tpu.concatenate %16, %15 in 2 : vector<6x16x15xf32>, vector<6x16x1xf32> -> vector<6x16x16xf32>
    %18 = arith.addf %14, %17 : vector<6x16x16xf32>
    %19 = vector.extract_strided_slice %14 {offsets = [0, 0, 0], sizes = [6, 16, 15], strides = [1, 1, 1]} : vector<6x16x16xf32> to vector<6x16x15xf32>
    %20 = tpu.concatenate %15, %19 in 2 : vector<6x16x1xf32>, vector<6x16x15xf32> -> vector<6x16x16xf32>
    %21 = arith.addf %18, %20 : vector<6x16x16xf32>
    %22 = arith.subf %7, %21 : vector<6x16x16xf32>
    %23 = math.absf %22 : vector<6x16x16xf32>
    %cst_8 = arith.constant dense<0.000000e+00> : vector<6x16xf32>
    %24 = vector.multi_reduction <add>, %23, %cst_8 [1] : vector<6x16x16xf32> to vector<6x16xf32>
    %c1_i32 = arith.constant 1 : i32
    %25 = arith.muli %arg0, %c1_i32 : i32
    %26 = arith.addi %25, %arg1 : i32
    %c6_i32 = arith.constant 6 : i32
    %27 = arith.muli %26, %c6_i32 : i32
    %28 = tpu.iota {dimensions = array<i32: 0>} : vector<6x16xi32>
    %c6_i32_9 = arith.constant 6 : i32
    %29 = arith.subi %c6_i32_9, %27 : i32
    %30 = vector.broadcast %29 : i32 to vector<6x16xi32>
    %31 = arith.cmpi slt, %28, %30 : vector<6x16xi32>
    %cst_10 = arith.constant 0.000000e+00 : f32
    %32 = vector.broadcast %cst_10 : f32 to vector<6x16xf32>
    %33 = arith.select %31, %24, %32 : vector<6x16xi1>, vector<6x16xf32>
    %c0_11 = arith.constant 0 : index
    %c0_12 = arith.constant 0 : index
    %34 = vector.load %arg5[%c0_11, %c0_12] : memref<6x16xf32, #tpu.memory_space<vmem>>, vector<6x16xf32>
    %35 = arith.addf %34, %33 : vector<6x16xf32>
    %c0_13 = arith.constant 0 : index
    %c0_14 = arith.constant 0 : index
    %36 = vector.load %arg5[%c0_13, %c0_14] : memref<6x16xf32, #tpu.memory_space<vmem>>, vector<6x16xf32>
    tpu.vector_store %arg5[%c0_13, %c0_14], %35 {strides = array<i32>} : memref<6x16xf32, #tpu.memory_space<vmem>>, vector<6x16xf32>,
    %c0_i32_15 = arith.constant 0 : i32
    %37 = arith.cmpi eq, %arg1, %c0_i32_15 : i32
    %38 = arith.extui %37 : i1 to i32
    %c0_i32_16 = arith.constant 0 : i32
    %39 = arith.cmpi ne, %38, %c0_i32_16 : i32
    scf.if %39 {
      %cst_17 = arith.constant 0.000000e+00 : f32
      %40 = vector.broadcast %cst_17 : f32 to vector<1x1x1xf32>
      %c0_18 = arith.constant 0 : index
      %c0_19 = arith.constant 0 : index
      %41 = vector.load %arg5[%c0_18, %c0_19] : memref<6x16xf32, #tpu.memory_space<vmem>>, vector<6x16xf32>
      %42 = vector.shape_cast %41 : vector<6x16xf32> to vector<1x6x16xf32>
      %cst_20 = arith.constant dense<0.000000e+00> : vector<1xf32>
      %43 = vector.multi_reduction <add>, %42, %cst_20 [1, 2] : vector<1x6x16xf32> to vector<1xf32>
      %44 = vector.shape_cast %43 : vector<1xf32> to vector<1x1x1xf32>
      %45 = vector.extract %44[0, 0, 0] : f32 from vector<1x1x1xf32>
      %46 = vector.broadcast %45 : f32 to vector<1x1x1xf32>
      %47 = arith.addf %40, %46 : vector<1x1x1xf32>
      %c0_21 = arith.constant 0 : index
      %c0_22 = arith.constant 0 : index
      %c0_23 = arith.constant 0 : index
      %48 = vector.load %arg4[%c0_21, %c0_22, %c0_23] : memref<1x1x1xf32, #tpu.memory_space<vmem>>, vector<1x1x1xf32>
      tpu.vector_store %arg4[%c0_21, %c0_22, %c0_23], %47 {strides = array<i32>} : memref<1x1x1xf32, #tpu.memory_space<vmem>>, vector<1x1x1xf32>,
    } else {
    }
    return
  }
  func.func @transform_0(%arg0: i32, %arg1: i32) -> (i32, i32, i32) {
    %c1_i32 = arith.constant 1 : i32
    %0 = arith.muli %arg0, %c1_i32 : i32
    %1 = arith.addi %0, %arg1 : i32
    %c0_i32 = arith.constant 0 : i32
    %2 = arith.minsi %1, %c0_i32 : i32
    %c0_i32_0 = arith.constant 0 : i32
    %c0_i32_1 = arith.constant 0 : i32
    %c0_i32_2 = arith.constant 0 : i32
    return %2, %c0_i32_0, %c0_i32_1 : i32, i32, i32
  }
  func.func @transform_1(%arg0: i32, %arg1: i32) -> (i32, i32, i32) {
    %c1_i32 = arith.constant 1 : i32
    %0 = arith.muli %arg0, %c1_i32 : i32
    %1 = arith.addi %0, %arg1 : i32
    %c0_i32 = arith.constant 0 : i32
    %2 = arith.minsi %1, %c0_i32 : i32
    %c0_i32_0 = arith.constant 0 : i32
    %c0_i32_1 = arith.constant 0 : i32
    %c0_i32_2 = arith.constant 0 : i32
    return %2, %c0_i32_0, %c0_i32_1 : i32, i32, i32
  }
  func.func @transform_2(%arg0: i32, %arg1: i32) -> (i32, i32, i32) {
    %c0_i32 = arith.constant 0 : i32
    %c0_i32_0 = arith.constant 0 : i32
    %c0_i32_1 = arith.constant 0 : i32
    return %arg0, %c0_i32, %c0_i32_0 : i32, i32, i32
  }
}

</mosaic_0001>

<bundles_post_ra>
// kernel: tpu_custom_call.1
= control target key start
LH: loop header
LB: loop body
LE: loop exit
PB: predicated region body
PF: predicated region fallthrough
CT: control target
= control target key end

     0   :  { %7 = vsyncpa [#allocation4], 0  ;;  %s854_s0 = inlined_call_operand.hbm [shape: f32[6,16,16], index: 0, kind: input, shape index: {}]   ;;  %s855_s1 = inlined_call_operand.hbm [shape: f32[6,16,16], index: 1, kind: input, shape index: {}]   ;;  %s856_s2 = inlined_call_operand.hbm [shape: f32[1,1,1], index: 2, kind: output, shape index: {}]  }
   0x1   :  { %8 = vsyncpa [#allocation7], 0 }
   0x2   :  { %9 = vsyncpa [#allocation5], 0  ;;  %s21_s11 = sshll.u32 %s854_s0, 4  ;;  %s600_s12 = smov [#allocation3]   ;;  %s22_s11 = int_to_ptr.hbm [resolvable:$true] %s21_s11 }
   0x3   :  { %s23_s13 = sshll.u32 %s600_s12, 4  ;;  %s41_s16 = sshll.u32 %s855_s1, 4  ;;  %s24_s13 = int_to_ptr.vmem [resolvable:$true] %s23_s13  ;;  %s42_s16 = int_to_ptr.hbm [resolvable:$true] %s41_s16 }
   0x4   :  { %s601_s17 = smov 128   ;;  %s602_s18 = smov 8  }
   0x5   :  { %29 = dma.hbm_to_vmem [thread:$0]  %s22_s11, 1536, %s24_s13, [#allocation4], %s601_s17, %s601_s17, %s602_s18  }
   0x6   :  { %s603_s19 = smov [#allocation6]  }
   0x7   :  { %s43_s20 = sshll.u32 %s603_s19, 4  ;;  %s44_s20 = int_to_ptr.vmem [resolvable:$true] %s43_s20 }
   0x8   :  { %49 = dma.hbm_to_vmem [thread:$0]  %s42_s16, 1536, %s44_s20, [#allocation7], %s601_s17, %s601_s17, %s602_s18  }
   0x9   :  { %594 = dma.done.wait [#allocation4], 1536  }
   0xa   :  { %595 = vsyncadd [#allocation4], 4294965760 }
   0xb   :  { %596 = dma.done.wait [#allocation7], 1536  }
   0xc   :  { %597 = vsyncadd [#allocation7], 4294965760  ;;  %v76_v0 = vld [vmem:[#allocation3 + $0x20] sm:$0xff]  ;;  %v77_v1 = vld [vmem:[#allocation3 + $0x28] sm:$0xff]  ;;  %vm132_vm0 = vcmask 1046528   ;;  %vm181_vm1 = vcmask 1040384  }
   0xd   :  { %v88_v2 = vld [vmem:[#allocation6 + $0x20] sm:$0xff]  ;;  %v89_v3 = vld [vmem:[#allocation6 + $0x28] sm:$0xff]  ;;  %v74_v5 = vld [vmem:[#allocation3 + $0x10] sm:$0xff]  ;;  %s604_s0 = smov 127   ;;  %s605_s1 = smov 1   ;;  %vm278_vm2 = vcmask 121856  }
   0xe   :  { %v629_v4 = vsub.f32 %v76_v0, %v88_v2  ;;  %v75_v6 = vld [vmem:[#allocation3 + $0x18] sm:$0xff]  ;;  %v631_v7 = vsub.f32 %v77_v1, %v89_v3  ;;  %v86_v8 = vld [vmem:[#allocation6 + $0x10] sm:$0xff]  ;;  %v72_v10 = vld [vmem:[#allocation3] sm:$0xff]  ;;  %vm339_vm3 = vcmask 7168   ;;  %vm388_vm4 = vcmask 130048   ;;  %s607_s21 = smov [#allocation8]  }
   0xf   :  { %v87_v9 = vld [vmem:[#allocation6 + $0x18] sm:$0xff]  ;;  %v635_v13 = vsub.f32 %v74_v5, %v86_v8  ;;  %v73_v15 = vld [vmem:[#allocation3 + $0x8] sm:$0xff]  ;;  %v84_v16 = vld [vmem:[#allocation6] sm:$0xff]  ;;  %vm70_vm5 = vcmask 128000   ;;  %vm456_vm6 = vcmask 1041409   ;;  %vm458_vm7 = vcmask 1042434  }
  0x10   :  { %v139_v11 = vrot.slane %v629_v4, 1  ;;  %v188_v12 = vrot.slane %v629_v4, 7  ;;  %v637_v14 = vsub.f32 %v75_v6, %v87_v9  ;;  %v85_v17 = vld [vmem:[#allocation6 + $0x8] sm:$0xff]  ;;  %v140_v18 = vrot.slane %v631_v7, 1  ;;  %v78_v37 = vld [vmem:[#allocation3 + $0x30] sm:$0xff]  ;;  %v79_v42 = vld [vmem:[#allocation3 + $0x38] sm:$0xff] }
  0x11   :  { %v640_v19 = vsub.f32 %v72_v10, %v84_v16  ;;  %v642_v20 = vsub.f32 %v73_v15, %v85_v17  ;;  %v136_v22 = vrot.slane %v635_v13, 1  ;;  %v185_v24 = vrot.slane %v635_v13, 7  ;;  %v90_v38 = vld [vmem:[#allocation6 + $0x30] sm:$0xff]  ;;  %v91_v43 = vld [vmem:[#allocation6 + $0x38] sm:$0xff]  ;;  %v81_v8 = vld [vmem:[#allocation3 + $0x48] sm:$0xff]  ;;  %s495_s22 = sshll.u32 %s607_s21, 4  ;;  %s496_s22 = int_to_ptr.vmem [resolvable:$true] %s495_s22 }
  0x12   :  { %v214_v21 = vsel %vm181_vm1, 0.0, %v188_v12  ;;  %v137_v23 = vrot.slane %v637_v14, 1  ;;  %v141_v25 = vsel %vm132_vm0, %v139_v11, %v140_v18  ;;  %v165_v32 = vsel %vm132_vm0, %v140_v18, 0.0  ;;  %v93_v9 = vld [vmem:[#allocation6 + $0x48] sm:$0xff]  ;;  %v80_v10 = vld [vmem:[#allocation3 + $0x40] sm:$0xff]  ;;  %s497_s25 = sshll.u32 %s856_s2, 4  ;;  %s498_s25 = int_to_ptr.hbm [resolvable:$true] %s497_s25 }
  0x13   :  { %v133_v26 = vrot.slane %v640_v19, 1  ;;  %v134_v27 = vrot.slane %v642_v20, 1  ;;  %v182_v28 = vrot.slane %v640_v19, 7  ;;  %v173_v29 = vadd.f32 %v141_v25, %v629_v4  ;;  %v92_v11 = vld [vmem:[#allocation6 + $0x40] sm:$0xff]  ;;  %v95_v25 = vld [vmem:[#allocation6 + $0x58] sm:$0xff] }
  0x14   :  { %v138_v30 = vsel %vm132_vm0, %v136_v22, %v137_v23  ;;  %v213_v31 = vsel %vm181_vm1, 0.0, %v185_v24  ;;  %v189_v36 = vrot.slane %v631_v7, 7  ;;  %v164_v41 = vsel %vm132_vm0, %v137_v23, 0.0  ;;  %v83_v23 = vld [vmem:[#allocation3 + $0x58] sm:$0xff] }
  0x15   :  { %v171_v33 = vadd.f32 %v138_v30, %v635_v13  ;;  %v135_v34 = vsel %vm132_vm0, %v133_v26, %v134_v27  ;;  %v212_v35 = vsel %vm181_vm1, 0.0, %v182_v28  ;;  %v660_v39 = vadd.f32 %v214_v21, %v173_v29  ;;  %v82_v21 = vld [vmem:[#allocation3 + $0x50] sm:$0xff] }
  0x16   :  { %v169_v40 = vadd.f32 %v135_v34, %v640_v19  ;;  %v174_v45 = vadd.f32 %v165_v32, %v631_v7  ;;  %v186_v46 = vrot.slane %v637_v14, 7  ;;  %v163_v48 = vsel %vm132_vm0, %v134_v27, 0.0 }
  0x17   :  { %v664_v44 = vadd.f32 %v213_v31, %v171_v33  ;;  %250 = vrot.lane.b32.xlu2 %v660_v39, %s604_s0  ;;  %v183_v49 = vrot.slane %v642_v20, 7  ;;  %v674_v50 = vsub.f32 %v78_v37, %v90_v38  ;;  %v190_v51 = vsel %vm181_vm1, %v188_v12, %v189_v36 }
  0x18   :  { %v670_v47 = vadd.f32 %v212_v35, %v169_v40  ;;  %v172_v52 = vadd.f32 %v164_v41, %v637_v14  ;;  %v680_v53 = vsub.f32 %v79_v42, %v91_v43  ;;  %v187_v54 = vsel %vm181_vm1, %v185_v24, %v186_v46  ;;  %v94_v24 = vld [vmem:[#allocation6 + $0x50] sm:$0xff] }
  0x19   :  { %246 = vrot.lane.b32.xlu1 %v664_v44, %s604_s0  ;;  %v170_v55 = vadd.f32 %v163_v48, %v642_v20  ;;  %v184_v56 = vsel %vm181_vm1, %v182_v28, %v183_v49  ;;  %v142_v58 = vrot.slane %v674_v50, 1  ;;  %v689_v59 = vadd.f32 %v190_v51, %v174_v45 }
  0x1a   :  { %242 = vrot.lane.b32.xlu0 %v670_v47, %s604_s0  ;;  %v143_v57 = vrot.slane %v680_v53, 1  ;;  %v691_v60 = vadd.f32 %v187_v54, %v172_v52  ;;  %v191_v63 = vrot.slane %v674_v50, 7  ;;  %v192_v0 = vrot.slane %v680_v53, 7 }
  0x1b   :  { %v693_v61 = vadd.f32 %v184_v56, %v170_v55  ;;  %v713_v16 = vsub.f32 %v81_v8, %v93_v9  ;;  %v715_v17 = vsub.f32 %v80_v10, %v92_v11  ;;  %v728_v29 = vsub.f32 %v82_v21, %v94_v24 }
  0x1c   :  { %v166_v62 = vsel %vm132_vm0, %v143_v57, 0.0  ;;  %v144_v1 = vsel %vm132_vm0, %v142_v58, %v143_v57  ;;  %v193_v3 = vsel %vm181_vm1, %v191_v63, %v192_v0  ;;  %v215_v6 = vsel %vm181_vm1, 0.0, %v191_v63 }
  0x1d   :  { %v176_v2 = vadd.f32 %v166_v62, %v680_v53  ;;  %v175_v5 = vadd.f32 %v144_v1, %v674_v50  ;;  %v146_v18 = vrot.slane %v713_v16, 1  ;;  %v145_v22 = vrot.slane %v715_v17, 1 }
  0x1e   :  { %v194_v26 = vrot.slane %v715_v17, 7  ;;  %v195_v28 = vrot.slane %v713_v16, 7  ;;  %v730_v30 = vsub.f32 %v83_v23, %v95_v25  ;;  %v148_v35 = vrot.slane %v728_v29, 1 }
  0x1f   :  { %252 = vrot.lane.b32.xlu2 %v689_v59, %s604_s0  ;;  %v709_v12 = vadd.f32 %v193_v3, %v176_v2  ;;  %v711_v15 = vadd.f32 %v215_v6, %v175_v5  ;;  %v167_v27 = vsel %vm132_vm0, %v146_v18, 0.0  ;;  %v147_v31 = vsel %vm132_vm0, %v145_v22, %v146_v18 }
  0x20   :  { %v178_v32 = vadd.f32 %v167_v27, %v713_v16  ;;  %v196_v33 = vsel %vm181_vm1, %v194_v26, %v195_v28  ;;  %v177_v34 = vadd.f32 %v147_v31, %v715_v17  ;;  %v149_v36 = vrot.slane %v730_v30, 1 }
  0x21   :  { %248 = vrot.lane.b32.xlu1 %v691_v60, %s604_s0  ;;  %v216_v37 = vsel %vm181_vm1, 0.0, %v194_v26  ;;  %v198_v41 = vrot.slane %v730_v30, 7  ;;  %v197_v45 = vrot.slane %v728_v29, 7  ;;  %vm460_vm8 = vcmask 1043459  }
  0x22   :  { %244 = vrot.lane.b32.xlu0 %v693_v61, %s604_s0  ;;  %v745_v38 = vadd.f32 %v196_v33, %v178_v32  ;;  %v168_v40 = vsel %vm132_vm0, %v149_v36, 0.0  ;;  %v749_v42 = vadd.f32 %v216_v37, %v177_v34  ;;  %v150_v43 = vsel %vm132_vm0, %v148_v35, %v149_v36 }
  0x23   :  { %v180_v46 = vadd.f32 %v168_v40, %v730_v30  ;;  %v179_v48 = vadd.f32 %v150_v43, %v728_v29  ;;  %v199_v49 = vsel %vm181_vm1, %v197_v45, %v198_v41  ;;  %v217_v51 = vsel %vm181_vm1, 0.0, %v197_v45 }
  0x24   :  { %v108_v35 = vmul.f32 9.0, %v640_v19  ;;  %v110_v37 = vmul.f32 9.0, %v635_v13  ;;  %v109_v43 = vmul.f32 9.0, %v642_v20  ;;  %v113_v20 = vmul.f32 9.0, %v631_v7 }
  0x25   :  { %v763_v52 = vadd.f32 %v199_v49, %v180_v46  ;;  %v765_v54 = vadd.f32 %v217_v51, %v179_v48  ;;  %vm462_vm9 = vcmask 1044484   ;;  %vm464_vm10 = vcmask 1045509  }
  0x26   :  { %vm488_vm12 = vcmask 0  }
  0x27   :  { %303 = vrot.lane.b32.xlu2 %v670_v47, %s605_s1 }
  0x29   :  { %256 = vrot.lane.b32.xlu1 %v709_v12, %s604_s0 }
  0x2a   :  { %254 = vrot.lane.b32.xlu0 %v711_v15, %s604_s0 }
  0x2f   :  { %309 = vrot.lane.b32.xlu2 %v691_v60, %s605_s1 }
  0x31   :  { %307 = vrot.lane.b32.xlu1 %v664_v44, %s605_s1 }
  0x32   :  { %305 = vrot.lane.b32.xlu0 %v693_v61, %s605_s1 }
  0x37   :  { %311 = vrot.lane.b32.xlu2 %v660_v39, %s605_s1 }
  0x39   :  { %260 = vrot.lane.b32.xlu1 %v745_v38, %s604_s0 }
  0x3a   :  { %258 = vrot.lane.b32.xlu0 %v749_v42, %s604_s0 }
  0x3f   :  { %264 = vrot.lane.b32.xlu2 %v763_v52, %s604_s0 }
  0x41   :  { %262 = vrot.lane.b32.xlu1 %v765_v54, %s604_s0 }
  0x42   :  { %313 = vrot.lane.b32.xlu0 %v689_v59, %s605_s1 }
  0x47   :  { %319 = vrot.lane.b32.xlu2 %v749_v42, %s605_s1 }
  0x49   :  { %317 = vrot.lane.b32.xlu1 %v709_v12, %s605_s1 }
  0x4a   :  { %315 = vrot.lane.b32.xlu0 %v711_v15, %s605_s1 }
  0x4f   :  { %325 = vrot.lane.b32.xlu2 %v763_v52, %s605_s1 }
  0x51   :  { %323 = vrot.lane.b32.xlu1 %v765_v54, %s605_s1 }
  0x52   :  { %321 = vrot.lane.b32.xlu0 %v745_v38, %s605_s1 }
  0x71   :  { %v251_v55 = vpop.permute.xlu2 %250 }
  0x72   :  { %v283_v21 = vsel %vm278_vm2, %v251_v55, 0.0 }
  0x73   :  { %v295_v32 = vadd.f32 %v283_v21, %v660_v39  ;;  %v111_v39 = vmul.f32 9.0, %v637_v14 }
  0x79   :  { %v253_v56 = vpop.permute.xlu2 %252 }
  0x7a   :  { %v284_v51 = vsel %vm278_vm2, %v253_v56, 0.0 }
  0x81   :  { %v304_v57 = vpop.permute.xlu2 %303 }
  0x82   :  { %v340_v24 = vsel %vm339_vm3, 0.0, %v304_v57 }
  0x89   :  { %v310_v63 = vpop.permute.xlu2 %309 }
  0x8a   :  { %v343_v33 = vsel %vm339_vm3, 0.0, %v310_v63 }
  0x8b   :  { %v247_v58 = vpop.permute.xlu1 %246 }
  0x8c   :  { %v243_v62 = vpop.permute.xlu0 %242  ;;  %v281_v11 = vsel %vm278_vm2, %v247_v58, 0.0  ;;  %v296_v58 = vadd.f32 %v284_v51, %v689_v59 }
  0x8d   :  { %v279_v10 = vsel %vm278_vm2, %v243_v62, 0.0  ;;  %v293_v26 = vadd.f32 %v281_v11, %v664_v44  ;;  %v606_v11 = vmov 0.0  }
  0x8e   :  { %v291_v22 = vadd.f32 %v279_v10, %v670_v47  ;;  %71 = vst.msk [vmem:[#allocation2] sm:$0x3f] %vm70_vm5, %v606_v11 }
  0x90   :  { %v352_v36 = vadd.f32 %v340_v24, %v291_v22 }
  0x91   :  { %v312_v3 = vpop.permute.xlu2 %311 }
  0x92   :  { %v344_v28 = vsel %vm339_vm3, 0.0, %v312_v3 }
  0x93   :  { %v249_v0 = vpop.permute.xlu1 %248  ;;  %v356_v41 = vadd.f32 %v344_v28, %v295_v32 }
  0x94   :  { %v245_v1 = vpop.permute.xlu0 %244  ;;  %v282_v18 = vsel %vm278_vm2, %v249_v0, 0.0 }
  0x95   :  { %v280_v23 = vsel %vm278_vm2, %v245_v1, 0.0  ;;  %v294_v27 = vadd.f32 %v282_v18, %v691_v60  ;;  %v112_v60 = vmul.f32 9.0, %v629_v4 }
  0x96   :  { %v292_v47 = vadd.f32 %v280_v23, %v693_v61  ;;  %v364_v61 = vsub.f32 %v108_v35, %v352_v36 }
  0x97   :  { %v355_v46 = vadd.f32 %v343_v33, %v294_v27  ;;  %v368_v19 = vsub.f32 %v112_v60, %v356_v41  ;;  %v114_v33 = vmul.f32 9.0, %v674_v50  ;;  %v116_v60 = vmul.f32 9.0, %v715_v17 }
  0x98   :  { %v376_v4 = vand.u32 2147483647, %v364_v61  ;;  %v118_v17 = vmul.f32 9.0, %v728_v29 }
  0x99   :  { %v265_v9 = vpop.permute.xlu2 %264  ;;  %v367_v57 = vsub.f32 %v111_v39, %v355_v46  ;;  %v380_v0 = vand.u32 2147483647, %v368_v19 }
  0x9a   :  { %v290_v56 = vsel %vm278_vm2, %v265_v9, 0.0  ;;  %v389_v7 = vsel %vm388_vm4, %v376_v4, 0.0 }
  0x9b   :  { %v257_v2 = vpop.permute.xlu1 %256  ;;  %v379_v3 = vand.u32 2147483647, %v367_v57  ;;  %v407_v22 = vsel %vm388_vm4, %v380_v0, 0.0  ;;  %v302_v9 = vadd.f32 %v290_v56, %v763_v52 }
  0x9c   :  { %v255_v5 = vpop.permute.xlu0 %254 }
  0x9d   :  { %v285_v10 = vsel %vm278_vm2, %v255_v5, 0.0 }
  0x9e   :  { %v297_v5 = vadd.f32 %v285_v10, %v711_v15 }
  0xa1   :  { %v320_v48 = vpop.permute.xlu2 %319 }
  0xa2   :  { %v348_v15 = vsel %vm339_vm3, 0.0, %v320_v48 }
  0xa3   :  { %v308_v6 = vpop.permute.xlu1 %307 }
  0xa4   :  { %v306_v8 = vpop.permute.xlu0 %305  ;;  %v342_v25 = vsel %vm339_vm3, 0.0, %v308_v6 }
  0xa5   :  { %v341_v31 = vsel %vm339_vm3, 0.0, %v306_v8  ;;  %v354_v44 = vadd.f32 %v342_v25, %v293_v26  ;;  %v286_v8 = vsel %vm278_vm2, %v257_v2, 0.0  ;;  %v399_v25 = vsel %vm388_vm4, %v379_v3, 0.0 }
  0xa6   :  { %v353_v45 = vadd.f32 %v341_v31, %v292_v47  ;;  %v298_v2 = vadd.f32 %v286_v8, %v709_v12  ;;  %v115_v31 = vmul.f32 9.0, %v680_v53  ;;  %v119_v53 = vmul.f32 9.0, %v730_v30 }
  0xa7   :  { %v366_v49 = vsub.f32 %v110_v37, %v354_v44  ;;  %v117_v30 = vmul.f32 9.0, %v713_v16 }
  0xa8   :  { %v365_v55 = vsub.f32 %v109_v43, %v353_v45 }
  0xa9   :  { %v378_v62 = vand.u32 2147483647, %v366_v49  ;;  %v326_v21 = vpop.permute.xlu2 %325 }
  0xaa   :  { %v377_v14 = vand.u32 2147483647, %v365_v55  ;;  %v351_v28 = vsel %vm339_vm3, 0.0, %v326_v21 }
  0xab   :  { %v800_v34 = vpop.permute.xlu1 %260  ;;  %v398_v59 = vsel %vm388_vm4, %v378_v62, 0.0  ;;  %v363_v43 = vadd.f32 %v351_v28, %v302_v9 }
  0xac   :  { %v259_v40 = vpop.permute.xlu0 %258  ;;  %v390_v23 = vsel %vm388_vm4, %v377_v14, 0.0  ;;  %v400_v27 = vadd.f32 %v399_v25, %v398_v59 }
  0xad   :  { %v287_v24 = vsel %vm278_vm2, %v259_v40, 0.0  ;;  %v391_v47 = vadd.f32 %v390_v23, %v389_v7 }
  0xae   :  { %v299_v52 = vadd.f32 %v287_v24, %v749_v42  ;;  %v401_v50 = vrot.slane %v400_v27, 4  ;;  %v288_v42 = vsel %vm278_vm2, %v800_v34, 0.0  ;;  %v375_v34 = vsub.f32 %v119_v53, %v363_v43 }
  0xaf   :  { %v392_v39 = vrot.slane %v391_v47, 4  ;;  %v300_v19 = vadd.f32 %v288_v42, %v745_v38 }
  0xb0   :  { %v360_v46 = vadd.f32 %v348_v15, %v299_v52  ;;  %v402_v57 = vadd.f32 %v401_v50, %v400_v27 }
  0xb2   :  { %v403_v56 = vrot.slane %v402_v57, 2 }
  0xb3   :  { %v263_v13 = vpop.permute.xlu1 %262 }
  0xb4   :  { %v314_v63 = vpop.permute.xlu0 %313  ;;  %v289_v61 = vsel %vm278_vm2, %v263_v13, 0.0  ;;  %v404_v23 = vadd.f32 %v403_v56, %v402_v57 }
  0xb5   :  { %v345_v1 = vsel %vm339_vm3, 0.0, %v314_v63  ;;  %v372_v63 = vsub.f32 %v116_v60, %v360_v46 }
  0xb6   :  { %v357_v6 = vadd.f32 %v345_v1, %v296_v58  ;;  %v301_v58 = vadd.f32 %v289_v61, %v765_v54  ;;  %v405_v52 = vrot.slane %v404_v23, 1 }
  0xb7   :  { %v384_v11 = vand.u32 2147483647, %v372_v63 }
  0xb8   :  { %v369_v18 = vsub.f32 %v113_v20, %v357_v6  ;;  %v393_v20 = vadd.f32 %v392_v39, %v391_v47  ;;  %v387_v6 = vand.u32 2147483647, %v375_v34  ;;  %v406_v53 = vadd.f32 %v405_v52, %v404_v23 }
  0xb9   :  { %v425_v25 = vsel %vm388_vm4, %v384_v11, 0.0 }
  0xba   :  { %v381_v26 = vand.u32 2147483647, %v369_v18  ;;  %v394_v10 = vrot.slane %v393_v20, 2  ;;  %v435_v9 = vsel %vm388_vm4, %v387_v6, 0.0 }
  0xbb   :  { %v318_v32 = vpop.permute.xlu1 %317 }
  0xbc   :  { %v408_v35 = vsel %vm388_vm4, %v381_v26, 0.0  ;;  %v347_v12 = vsel %vm339_vm3, 0.0, %v318_v32  ;;  %v316_v36 = vpop.permute.xlu0 %315 }
  0xbd   :  { %v409_v37 = vadd.f32 %v408_v35, %v407_v22  ;;  %v359_v44 = vadd.f32 %v347_v12, %v298_v2  ;;  %v346_v40 = vsel %vm339_vm3, 0.0, %v316_v36 }
  0xbe   :  { %v358_v41 = vadd.f32 %v346_v40, %v297_v5  ;;  %v395_v5 = vadd.f32 %v394_v10, %v393_v20  ;;  %v445_v40 = vlaneseq }
  0xbf   :  { %v371_v45 = vsub.f32 %v115_v31, %v359_v44  ;;  %v410_v49 = vrot.slane %v409_v37, 4 }
  0xc0   :  { %v370_v48 = vsub.f32 %v114_v33, %v358_v41  ;;  %v396_v35 = vrot.slane %v395_v5, 1  ;;  %v446_v46 = vshrl.u32 %v445_v40, 7 }
  0xc1   :  { %v383_v51 = vand.u32 2147483647, %v371_v45  ;;  %v411_v38 = vadd.f32 %v410_v49, %v409_v37 }
  0xc2   :  { %v382_v55 = vand.u32 2147483647, %v370_v48  ;;  %v397_v41 = vadd.f32 %v396_v35, %v395_v5  ;;  %vm449_vm11 = vcmp.lt.s32.totalorder %v446_v46, 6 }
  0xc3   :  { %v417_v4 = vsel %vm388_vm4, %v383_v51, 0.0  ;;  %v324_v62 = vpop.permute.xlu1 %323  ;;  %v412_v7 = vrot.slane %v411_v38, 2 }
  0xc4   :  { %v416_v13 = vsel %vm388_vm4, %v382_v55, 0.0  ;;  %v350_v0 = vsel %vm339_vm3, 0.0, %v324_v62  ;;  %v322_v14 = vpop.permute.xlu0 %321  ;;  %v457_v48 = vsel %vm456_vm6, %v406_v53, %v397_v41 }
  0xc5   :  { %v418_v1 = vadd.f32 %v417_v4, %v416_v13  ;;  %v362_v3 = vadd.f32 %v350_v0, %v301_v58  ;;  %v349_v29 = vsel %vm339_vm3, 0.0, %v322_v14  ;;  %v413_v28 = vadd.f32 %v412_v7, %v411_v38 }
  0xc6   :  { %v361_v16 = vadd.f32 %v349_v29, %v300_v19 }
  0xc7   :  { %v419_v54 = vrot.slane %v418_v1, 4  ;;  %v374_v8 = vsub.f32 %v118_v17, %v362_v3  ;;  %v414_v36 = vrot.slane %v413_v28, 1 }
  0xc8   :  { %v373_v59 = vsub.f32 %v117_v30, %v361_v16  ;;  %v468_v30 = vld [vmem:[#allocation2] sm:$0x3f] }
  0xc9   :  { %v420_v18 = vadd.f32 %v419_v54, %v418_v1  ;;  %v386_v21 = vand.u32 2147483647, %v374_v8  ;;  %v415_v42 = vadd.f32 %v414_v36, %v413_v28 }
  0xca   :  { %v385_v22 = vand.u32 2147483647, %v373_v59 }
  0xcb   :  { %v421_v24 = vrot.slane %v420_v18, 2  ;;  %v434_v2 = vsel %vm388_vm4, %v386_v21, 0.0  ;;  %v459_v51 = vsel %vm458_vm7, %v415_v42, %v457_v48 }
  0xcc   :  { %v436_v26 = vadd.f32 %v435_v9, %v434_v2  ;;  %v426_v27 = vsel %vm388_vm4, %v385_v22, 0.0 }
  0xcd   :  { %v427_v31 = vadd.f32 %v426_v27, %v425_v25  ;;  %v422_v32 = vadd.f32 %v421_v24, %v420_v18 }
  0xce   :  { %v437_v33 = vrot.slane %v436_v26, 4 }
  0xcf   :  { %v428_v47 = vrot.slane %v427_v31, 4  ;;  %v423_v37 = vrot.slane %v422_v32, 1 }
  0xd0   :  { %v438_v12 = vadd.f32 %v437_v33, %v436_v26 }
  0xd1   :  { %v429_v15 = vadd.f32 %v428_v47, %v427_v31  ;;  %v424_v45 = vadd.f32 %v423_v37, %v422_v32 }
  0xd2   :  { %v439_v44 = vrot.slane %v438_v12, 2 }
  0xd3   :  { %v430_v60 = vrot.slane %v429_v15, 2  ;;  %v461_v55 = vsel %vm460_vm8, %v424_v45, %v459_v51 }
  0xd4   :  { %v440_v50 = vadd.f32 %v439_v44, %v438_v12 }
  0xd5   :  { %v431_v43 = vadd.f32 %v430_v60, %v429_v15 }
  0xd6   :  { %v441_v39 = vrot.slane %v440_v50, 1 }
  0xd7   :  { %v432_v61 = vrot.slane %v431_v43, 1 }
  0xd8   :  { %v442_v49 = vadd.f32 %v441_v39, %v440_v50 }
  0xd9   :  { %v433_v19 = vadd.f32 %v432_v61, %v431_v43 }
  0xdb   :  { %v463_v17 = vsel %vm462_vm9, %v433_v19, %v461_v55 }
  0xdc   :  { %v465_v57 = vsel %vm464_vm10, %v442_v49, %v463_v17 }
  0xdd   :  { %v467_v58 = vsel %vm449_vm11, %v465_v57, 0.0 }
  0xde   :  { %v469_v34 = vadd.f32 %v468_v30, %v467_v58 }
  0xe0   :  { %471 = vst.msk [vmem:[#allocation2] sm:$0x3f] %vm70_vm5, %v469_v34 }
  0xe7   :  { %v475_v4 = vld [vmem:[#allocation2] sm:$0x3f] }
  0xe8   :  { %v476_v62 = vsel %vm70_vm5, %v475_v4, 0.0 }
  0xe9   :  { %477 = vadd.xlane.f32.xlu0 %v476_v62 }
 0x15c   :  { %v478_v20 = vpop.xlane.xlu0 %477 }
 0x15d   :  { %v479_v63 = vrot.slane %v478_v20, 4 }
 0x15f   :  { %v480_v13 = vadd.f32 %v479_v63, %v478_v20 }
 0x161   :  { %v481_v0 = vrot.slane %v480_v13, 2 }
 0x163   :  { %v482_v14 = vadd.f32 %v481_v0, %v480_v13 }
 0x165   :  { %v483_v38 = vrot.slane %v482_v14, 1 }
 0x167   :  { %v484_v1 = vadd.f32 %v483_v38, %v482_v14 }
 0x169   :  { %512 = vpush %v484_v1 }
 0x19a   :  { %s513_s26 = spop %512 }
 0x19b   :  { %v486_v3 = vstv %s513_s26 }
 0x19c   :  { %489 = vst.msk [vmem:[#allocation8] sm:$0x1] %vm488_vm12, %v486_v3 }
 0x19d   :  { %500 = dma.vmem_to_hbm [thread:$0]  %s496_s22, 16, %s498_s25, [#allocation5]  }
 0x19e   :  { %598 = dma.done.wait [#allocation5], 16  }
 0x19f   :  { %599 = vsyncadd [#allocation5], 4294967280 }
 0x1a0   :  { %505 = vsyncpa [#allocation4], 1 }
 0x1a1   :  { %506 = vsyncpa [#allocation7], 1 }
 0x1a2   :  { %507 = vsyncpa [#allocation5], 1 }

</bundles_post_ra>
